<compile_context>
chip_gen: v7x
topology: tpu7x:2x2x1
jax: 0.10.0
libtpu: 0.0.40
codegen_flags: <defaults>
</compile_context>

<pallas_src>
import jax
import jax.numpy as jnp
from jax.experimental import pallas as pl
from jax.experimental.pallas import tpu as pltpu


def _round_up(x, m):
    return ((x + m - 1) // m) * m


def _cdiv(a, b):
    return -(-a // b)


def _make_kernel(tk, x_resident):
    def kernel(x_ref, w_ref, b_ref, o_ref, acc_ref):
        # grid = (B_tiles, N_tiles, K_tiles); axis 2 (K) is the reduction axis.
        k = pl.program_id(2)

        @pl.when(k == 0)
        def _():
            acc_ref[...] = jnp.zeros_like(acc_ref)

        if x_resident:
            # x block covers the whole (padded) K; slice the current K tile.
            start = pl.multiple_of(k * tk, tk)
            x_blk = x_ref[:, pl.ds(start, tk)]
        else:
            x_blk = x_ref[...]

        acc_ref[...] += jnp.dot(
            x_blk, w_ref[...], preferred_element_type=jnp.float32
        )

        @pl.when(k == pl.num_programs(2) - 1)
        def _():
            o_ref[...] = (acc_ref[...] + b_ref[...]).astype(o_ref.dtype)

    return kernel


def prepare_hybrid_weights(w_ci, b_ci, w_cd, b_cd, enc_in, *, weight_dtype=jnp.float32):
    """One-time weight prep (cache & reuse across calls).

    w_ci: [P, S]; b_ci: [P]; w_cd: [P*C, S*C]; b_cd: [P*C]; enc_in = C.
    Returns a dict with the padded, transposed effective weight and tile metadata.
    """
    P, S = w_ci.shape
    C = int(enc_in)
    K = S * C           # contraction dim
    N = P * C           # output dim

    # ---- tile sizing (sized against v7x's 64 MiB VMEM; also fine on v5e/v6e) ----
    k128 = _round_up(K, 128)
    n128 = _round_up(N, 128)

    num_k_tiles = _cdiv(k128, 2048)                     # target <=2048-wide K tiles
    tk = _round_up(_cdiv(k128, num_k_tiles), 128)
    Kp = tk * num_k_tiles

    if n128 <= 128:
        tn = n128
        Np = n128
    else:
        # >=2 N tiles so the "parallel" N axis feeds both v7x TensorCores.
        num_n_tiles = max(2, _cdiv(n128, 1024))
        tn = _round_up(_cdiv(n128, num_n_tiles), 128)
        Np = tn * num_n_tiles

    # ---- fuse CI into CD (plain XLA, done once) ----
    eye_c = jnp.eye(C, dtype=w_cd.dtype)
    ci_as_cd = jnp.einsum('ps,cd->pcsd', w_ci, eye_c).reshape(N, K)   # [P*C, S*C]
    w_eff = (w_cd + ci_as_cd).T                                       # [K, N] pre-transposed
    b_eff = b_cd + jnp.repeat(b_ci, C)                                # [N]

    w_p = jnp.pad(w_eff, ((0, Kp - K), (0, Np - N))).astype(weight_dtype)
    b_p = jnp.pad(b_eff, (0, Np - N)).reshape(1, Np).astype(jnp.float32)

    return dict(w_p=w_p, b_p=b_p, S=S, C=C, P=P, K=K, N=N,
                Kp=Kp, Np=Np, tk=tk, tn=tn,
                weight_dtype=jnp.dtype(weight_dtype))


def hybrid_linear_prepared(x, prep):
    """x: [B, S, C] -> [B, P, C] using cached prepared weights."""
    B, S, C = x.shape
    assert S == prep['S'] and C == prep['C'], "input shape mismatch vs prepared weights"
    K, N = prep['K'], prep['N']
    Kp, Np, tk, tn = prep['Kp'], prep['Np'], prep['tk'], prep['tn']
    wdt = prep['weight_dtype']

    # Batch tiling: whole batch if small, else 256-row tiles (bounds accumulator/x VMEM).
    if B <= 256:
        tb, Bp = B, B
    else:
        tb = 256
        Bp = _round_up(B, tb)

    x_flat = x.reshape(B, K)                       # row-major == torch .view
    if wdt == jnp.dtype(jnp.bfloat16):
        x_flat = x_flat.astype(jnp.bfloat16)       # halve streamed activation bytes too
    x_p = jnp.pad(x_flat, ((0, Bp - B), (0, Kp - K)))

    # Keep x fully VMEM-resident across N/K iterations when it fits (double-buffered).
    x_itemsize = jnp.dtype(x_p.dtype).itemsize
    x_resident = (2 * tb * Kp * x_itemsize) <= (8 * 1024 * 1024)

    if x_resident:
        x_spec = pl.BlockSpec((tb, Kp), lambda b, n, k: (b, 0))
    else:
        x_spec = pl.BlockSpec((tb, tk), lambda b, n, k: (b, k))

    grid = (Bp // tb, Np // tn, Kp // tk)

    out_flat = pl.pallas_call(
        _make_kernel(tk, x_resident),
        out_shape=jax.ShapeDtypeStruct((Bp, Np), jnp.float32),
        grid_spec=pltpu.PrefetchScalarGridSpec(
            num_scalar_prefetch=0,
            grid=grid,
            in_specs=[
                x_spec,                                            # activations
                pl.BlockSpec((tk, tn), lambda b, n, k: (k, n)),    # effective weight stream
                pl.BlockSpec((1, tn), lambda b, n, k: (0, n)),     # fused bias
            ],
            out_specs=pl.BlockSpec((tb, tn), lambda b, n, k: (b, n)),
            scratch_shapes=[pltpu.VMEM((tb, tn), jnp.float32)],
        ),
        compiler_params=pltpu.CompilerParams(
            dimension_semantics=("parallel", "parallel", "arbitrary"),
            vmem_limit_bytes=48 * 1024 * 1024,
        ),
    )(x_p, prep['w_p'], prep['b_p'])

    return out_flat[:B, :N].reshape(B, prep['P'], C)


def hybrid_linear(x, w_ci, b_ci, w_cd, b_cd, *, weight_dtype=jnp.float32):
    """Convenience wrapper: prep + call (for repeated calls, cache prepare_hybrid_weights)."""
    prep = prepare_hybrid_weights(w_ci, b_ci, w_cd, b_cd, x.shape[2],
                                  weight_dtype=weight_dtype)
    return hybrid_linear_prepared(x, prep)


def reference(x, w_ci, b_ci, w_cd, b_cd):
    B, S, C = x.shape
    P = w_ci.shape[0]
    out_ci = jnp.einsum('bcs,ps->bpc', jnp.transpose(x, (0, 2, 1)), w_ci) \
        + b_ci[None, :, None]
    out_cd = (x.reshape(B, S * C) @ w_cd.T + b_cd).reshape(B, P, C)
    return out_ci + out_cd


def _run_case(key, B, seq_len, enc_in, pred_len):
    kx, k1, k2, k3, k4 = jax.random.split(key, 5)
    x = jax.random.normal(kx, (B, seq_len, enc_in), dtype=jnp.float32)

    bound_ci = 1.0 / (seq_len ** 0.5)
    bound_cd = 1.0 / ((seq_len * enc_in) ** 0.5)
    w_ci = jax.random.uniform(k1, (pred_len, seq_len), jnp.float32, -bound_ci, bound_ci)
    b_ci = jax.random.uniform(k2, (pred_len,), jnp.float32, -bound_ci, bound_ci)
    w_cd = jax.random.uniform(k3, (pred_len * enc_in, seq_len * enc_in),
                              jnp.float32, -bound_cd, bound_cd)
    b_cd = jax.random.uniform(k4, (pred_len * enc_in,), jnp.float32, -bound_cd, bound_cd)

    prep = prepare_hybrid_weights(w_ci, b_ci, w_cd, b_cd, enc_in)  # cached once
    out = hybrid_linear_prepared(x, prep)
    out = jax.block_until_ready(out)

    ref = reference(x, w_ci, b_ci, w_cd, b_cd)
    assert out.shape == (B, pred_len, enc_in)
    assert jnp.allclose(out, ref, atol=1e-4, rtol=1e-4), \
        f"mismatch vs reference (B={B}, S={seq_len}, C={enc_in}, P={pred_len})"


if __name__ == "__main__":
    key = jax.random.PRNGKey(0)
    k_small, k_big = jax.random.split(key, 2)

    # Small config consistent with the module (single-tile path).
    _run_case(k_small, B=2, seq_len=16, enc_in=8, pred_len=8)

    # Larger config exercising multi-tile N and multi-step K reduction with resident x.
    _run_case(k_big, B=2, seq_len=96, enc_in=24, pred_len=24)

    print("KERNEL_OK")
</pallas_src>

<mosaic_0001>
module attributes {stable_mosaic.version = 11 : i64} {
  func.func @kernel(%arg0: i32, %arg1: i32, %arg2: i32, %arg3: memref<2x128xf32, #tpu.memory_space<vmem>>, %arg4: memref<128x128xf32, #tpu.memory_space<vmem>>, %arg5: memref<1x128xf32, #tpu.memory_space<vmem>>, %arg6: memref<2x128xf32, #tpu.memory_space<vmem>>, %arg7: memref<2x128xf32, #tpu.memory_space<vmem>>) attributes {dimension_semantics = [#tpu.dimension_semantics<parallel>, #tpu.dimension_semantics<parallel>, #tpu.dimension_semantics<arbitrary>], iteration_bounds = array<i64: 1, 1, 1>, scalar_prefetch = 0 : i64, scratch_operands = 1 : i64, tpu.core_type = #tpu.core_type<tc>, window_params = [{transform_indices = @transform_0, window_bounds = array<i64: 2, 128>}, {transform_indices = @transform_1, window_bounds = array<i64: 128, 128>}, {transform_indices = @transform_2, window_bounds = array<i64: 1, 128>}, {transform_indices = @transform_3, window_bounds = array<i64: 2, 128>}]} {
    %c0_i32 = arith.constant 0 : i32
    %0 = arith.cmpi eq, %arg2, %c0_i32 : i32
    %1 = arith.extui %0 : i1 to i32
    %c0_i32_0 = arith.constant 0 : i32
    %2 = arith.cmpi ne, %1, %c0_i32_0 : i32
    scf.if %2 {
      %cst_9 = arith.constant 0.000000e+00 : f32
      %15 = vector.broadcast %cst_9 : f32 to vector<2x128xf32>
      %c0_10 = arith.constant 0 : index
      %c0_11 = arith.constant 0 : index
      %16 = vector.load %arg7[%c0_10, %c0_11] : memref<2x128xf32, #tpu.memory_space<vmem>>, vector<2x128xf32>
      tpu.vector_store %arg7[%c0_10, %c0_11], %15 {strides = array<i32>} : memref<2x128xf32, #tpu.memory_space<vmem>>, vector<2x128xf32>,
    } else {
    }
    %c128_i32 = arith.constant 128 : i32
    %3 = arith.muli %arg2, %c128_i32 : i32
    %4 = tpu.assume_multiple %3, 128 : i32
    %c0 = arith.constant 0 : index
    %5 = arith.index_cast %4 : i32 to index
    %6 = vector.load %arg3[%c0, %5] : memref<2x128xf32, #tpu.memory_space<vmem>>, vector<2x128xf32>
    %c0_1 = arith.constant 0 : index
    %c0_2 = arith.constant 0 : index
    %7 = vector.load %arg7[%c0_1, %c0_2] : memref<2x128xf32, #tpu.memory_space<vmem>>, vector<2x128xf32>
    %c0_3 = arith.constant 0 : index
    %c0_4 = arith.constant 0 : index
    %8 = vector.load %arg4[%c0_3, %c0_4] : memref<128x128xf32, #tpu.memory_space<vmem>>, vector<128x128xf32>
    %cst = arith.constant dense<0.000000e+00> : vector<2x128xf32>
    %9 = tpu.matmul %6, %8, %cst {dimension_numbers = #tpu.dot_dimension_numbers<[1], [0], [0], [1], [0, 0, 1, 1], [], []>} : vector<2x128xf32>, vector<128x128xf32>, vector<2x128xf32> -> vector<2x128xf32>
    %10 = arith.addf %7, %9 : vector<2x128xf32>
    %c0_5 = arith.constant 0 : index
    %c0_6 = arith.constant 0 : index
    %11 = vector.load %arg7[%c0_5, %c0_6] : memref<2x128xf32, #tpu.memory_space<vmem>>, vector<2x128xf32>
    tpu.vector_store %arg7[%c0_5, %c0_6], %10 {strides = array<i32>} : memref<2x128xf32, #tpu.memory_space<vmem>>, vector<2x128xf32>,
    %c0_i32_7 = arith.constant 0 : i32
    %12 = arith.cmpi eq, %arg2, %c0_i32_7 : i32
    %13 = arith.extui %12 : i1 to i32
    %c0_i32_8 = arith.constant 0 : i32
    %14 = arith.cmpi ne, %13, %c0_i32_8 : i32
    scf.if %14 {
      %c0_9 = arith.constant 0 : index
      %c0_10 = arith.constant 0 : index
      %15 = vector.load %arg7[%c0_9, %c0_10] : memref<2x128xf32, #tpu.memory_space<vmem>>, vector<2x128xf32>
      %c0_11 = arith.constant 0 : index
      %c0_12 = arith.constant 0 : index
      %16 = vector.load %arg5[%c0_11, %c0_12] : memref<1x128xf32, #tpu.memory_space<vmem>>, vector<1x128xf32>
      %17 = vector.broadcast %16 : vector<1x128xf32> to vector<2x128xf32>
      %18 = arith.addf %15, %17 : vector<2x128xf32>
      %c0_13 = arith.constant 0 : index
      %c0_14 = arith.constant 0 : index
      %19 = vector.load %arg6[%c0_13, %c0_14] : memref<2x128xf32, #tpu.memory_space<vmem>>, vector<2x128xf32>
      tpu.vector_store %arg6[%c0_13, %c0_14], %18 {strides = array<i32>} : memref<2x128xf32, #tpu.memory_space<vmem>>, vector<2x128xf32>,
    } else {
    }
    return
  }
  func.func @transform_0(%arg0: i32, %arg1: i32, %arg2: i32) -> (i32, i32) {
    %c0_i32 = arith.constant 0 : i32
    %c0_i32_0 = arith.constant 0 : i32
    return %arg0, %c0_i32 : i32, i32
  }
  func.func @transform_1(%arg0: i32, %arg1: i32, %arg2: i32) -> (i32, i32) {
    %c0_i32 = arith.constant 0 : i32
    return %arg2, %arg1 : i32, i32
  }
  func.func @transform_2(%arg0: i32, %arg1: i32, %arg2: i32) -> (i32, i32) {
    %c0_i32 = arith.constant 0 : i32
    %c0_i32_0 = arith.constant 0 : i32
    return %c0_i32, %arg1 : i32, i32
  }
  func.func @transform_3(%arg0: i32, %arg1: i32, %arg2: i32) -> (i32, i32) {
    %c0_i32 = arith.constant 0 : i32
    return %arg0, %arg1 : i32, i32
  }
}

</mosaic_0001>

<bundles_post_ra>
// kernel: tpu_custom_call.1
= control target key start
LH: loop header
LB: loop body
LE: loop exit
PB: predicated region body
PF: predicated region fallthrough
CT: control target
= control target key end

     0   :  { %8 = vsyncpa [#allocation4], 0  ;;  %s401_s0 = inlined_call_operand.hbm [shape: f32[2,128], index: 0, kind: input, shape index: {}]   ;;  %s402_s1 = inlined_call_operand.hbm [shape: f32[128,128], index: 1, kind: input, shape index: {}]   ;;  %s403_s2 = inlined_call_operand.vmem [shape: f32[1,128], index: 2, kind: input, shape index: {}]   ;;  %s404_s3 = inlined_call_operand.hbm [shape: f32[2,128], index: 3, kind: output, shape index: {}]  }
   0x1   :  { %9 = vsyncpa [#allocation7], 0 }
   0x2   :  { %10 = vsyncpa [#allocation5], 0  ;;  %s327_s12 = smov [#allocation3]   ;;  %s328_s14 = smov [#allocation6]  }
   0x3   :  { %s17_s13 = sshll.u32 %s327_s12, 4  ;;  %s26_s15 = sshll.u32 %s328_s14, 4  ;;  %s18_s13 = int_to_ptr.vmem [resolvable:$true] %s17_s13  ;;  %s355_s15 = int_to_ptr.vmem [resolvable:$true] %s26_s15 }
   0x4   :  { %s255_s18 = scalar_lea.hbm %s401_s0, 32 }
   0x5   :  { %p256_p0 = scmp.ne.s32.totalorder %s401_s0, %s255_s18  ;;  %p259_p1 = scmp.lt.u32.totalorder %s255_s18, %s401_s0 }
   0x7   :  { %p261_p2 = pnand %p259_p1, %p256_p0 }
   0x9   :  { %264 = shalt.err (!%p261_p2)
}
   0xa   :  { %s265_s23 = scalar_lea.vmem %s18_s13, 32  ;;  %p270_p4 = scmp.lt.s32.totalorder %s18_s13, %s18_s13 }
   0xb   :  { %p266_p3 = scmp.ne.s32.totalorder %s18_s13, %s265_s23  ;;  %p271_p5 = scmp.lt.s32.totalorder %s265_s23, %s265_s23 }
   0xd   :  { %p272_p6 = por %p271_p5, %p270_p4 }
   0xf   :  { %p273_p7 = pnand %p272_p6, %p266_p3 }
  0x11   :  { %276 = shalt.err (!%p273_p7)
}
  0x12   :  { %20 = dma.hbm_to_vmem [thread:$0]  %s401_s0, 32, %s18_s13, [#allocation4]  }
  0x13   :  { %s277_s28 = scalar_lea.hbm %s402_s1, 2048 }
  0x14   :  { %p278_p8 = scmp.ne.s32.totalorder %s402_s1, %s277_s28  ;;  %p281_p9 = scmp.lt.u32.totalorder %s277_s28, %s402_s1 }
  0x16   :  { %p283_p10 = pnand %p281_p9, %p278_p8 }
  0x18   :  { %286 = shalt.err (!%p283_p10)
}
  0x19   :  { %s287_s6 = scalar_lea.vmem %s355_s15, 2048  ;;  %p292_p12 = scmp.lt.s32.totalorder %s355_s15, %s355_s15 }
  0x1a   :  { %p288_p11 = scmp.ne.s32.totalorder %s355_s15, %s287_s6  ;;  %p293_p13 = scmp.lt.s32.totalorder %s287_s6, %s287_s6 }
  0x1c   :  { %p294_p0 = por %p293_p13, %p292_p12 }
  0x1e   :  { %p295_p1 = pnand %p294_p0, %p288_p11 }
  0x20   :  { %298 = shalt.err (!%p295_p1)
}
  0x21   :  { %s329_s0 = smov 128   ;;  %s330_s7 = smov 8  }
  0x22   :  { %32 = dma.hbm_to_vmem [thread:$0]  %s402_s1, 2048, %s355_s15, [#allocation7], %s329_s0, %s329_s0, %s330_s7  }
  0x23   :  { %321 = dma.done.wait [#allocation4], 32  }
  0x24   :  { %322 = vsyncadd [#allocation4], 4294967264 }
  0x25   :  { %323 = dma.done.wait [#allocation7], 2048  }
  0x26   :  { %324 = vsyncadd [#allocation7], 4294965248  ;;  %v331_v0 = vmov 0.0|0.0   ;;  %v332_v1 = vmov 0.0   ;;  %vm333_vm0 = vmmov 0   ;;  %v52_v2 = vld [vmem:[#allocation6] sm:$0xff] }
  0x27   :  { %223 = vmatprep.subr.bf16.mxu0 %v331_v0  ;;  %45 = vst [vmem:[#allocation2] sm:$0x3] %v332_v1  ;;  %220 = vmatprep.mubr.msk.f32.mxu0 %vm333_vm0, %v332_v1  ;;  %v53_v3 = vld [vmem:[#allocation6 + $0x8] sm:$0xff]  ;;  %v54_v4 = vld [vmem:[#allocation6 + $0x10] sm:$0xff]  ;;  %v55_v6 = vld [vmem:[#allocation6 + $0x18] sm:$0xff]  ;;  %s334_s11 = smov [#allocation8]  }
  0x28   :  { %v224_v5 = vpack.c.bf16 %v53_v3, %v52_v2  ;;  %v227_v7 = vpack.c.bf16 %v55_v6, %v54_v4  ;;  %v56_v8 = vld [vmem:[#allocation6 + $0x20] sm:$0xff]  ;;  %v57_v9 = vld [vmem:[#allocation6 + $0x28] sm:$0xff]  ;;  %v58_v11 = vld [vmem:[#allocation6 + $0x30] sm:$0xff]  ;;  %s159_s12 = sshll.u32 %s334_s11, 4  ;;  %s160_s12 = int_to_ptr.vmem [resolvable:$true] %s159_s12 }
  0x29   :  { %v230_v10 = vpack.c.bf16 %v57_v9, %v56_v8  ;;  %v59_v12 = vld [vmem:[#allocation6 + $0x38] sm:$0xff]  ;;  %v60_v14 = vld [vmem:[#allocation6 + $0x40] sm:$0xff]  ;;  %v61_v15 = vld [vmem:[#allocation6 + $0x48] sm:$0xff]  ;;  %s299_s13 = scalar_lea.vmem %s160_s12, 32  ;;  %p304_p3 = scmp.lt.s32.totalorder %s160_s12, %s160_s12 }
  0x2a   :  { %225 = vmatpush3.bf16.msra.mxu0 %v224_v5  ;;  %v233_v13 = vpack.c.bf16 %v59_v12, %v58_v11  ;;  %v236_v16 = vpack.c.bf16 %v61_v15, %v60_v14  ;;  %v62_v17 = vld [vmem:[#allocation6 + $0x50] sm:$0xff]  ;;  %v63_v18 = vld [vmem:[#allocation6 + $0x58] sm:$0xff]  ;;  %v64_v20 = vld [vmem:[#allocation6 + $0x60] sm:$0xff]  ;;  %p300_p2 = scmp.ne.s32.totalorder %s160_s12, %s299_s13  ;;  %p305_p4 = scmp.lt.s32.totalorder %s299_s13, %s299_s13 }
  0x2b   :  { %226 = vmatprep.subr.bf16.mxu0 %v331_v0  ;;  %v239_v19 = vpack.c.bf16 %v63_v18, %v62_v17  ;;  %v65_v21 = vld [vmem:[#allocation6 + $0x68] sm:$0xff]  ;;  %v66_v23 = vld [vmem:[#allocation6 + $0x70] sm:$0xff]  ;;  %v67_v24 = vld [vmem:[#allocation6 + $0x78] sm:$0xff] }
  0x2c   :  { %v242_v22 = vpack.c.bf16 %v65_v21, %v64_v20  ;;  %v245_v25 = vpack.c.bf16 %v67_v24, %v66_v23  ;;  %v50_v26 = vld [vmem:[#allocation3] sm:$0x3]  ;;  %v170_v31 = vld [vmem:[%s403_s2] ss:$0 sm:$0xff]  ;;  %p306_p5 = por %p305_p4, %p304_p3 }
  0x2e   :  { %228 = vmatpush3.bf16.msra.mxu0 %v227_v7  ;;  %v51_v27 = vld [vmem:[#allocation2] sm:$0x3]  ;;  %p307_p6 = pnand %p306_p5, %p300_p2 }
  0x2f   :  { %229 = vmatprep.subr.bf16.mxu0 %v331_v0 }
  0x32   :  { %231 = vmatpush3.bf16.msra.mxu0 %v230_v10 }
  0x33   :  { %232 = vmatprep.subr.bf16.mxu0 %v331_v0 }
  0x36   :  { %234 = vmatpush3.bf16.msra.mxu0 %v233_v13 }
  0x37   :  { %235 = vmatprep.subr.bf16.mxu0 %v331_v0 }
  0x3a   :  { %237 = vmatpush3.bf16.msra.mxu0 %v236_v16 }
  0x3b   :  { %238 = vmatprep.subr.bf16.mxu0 %v331_v0 }
  0x3e   :  { %240 = vmatpush3.bf16.msra.mxu0 %v239_v19 }
  0x3f   :  { %241 = vmatprep.subr.bf16.mxu0 %v331_v0 }
  0x42   :  { %243 = vmatpush3.bf16.msra.mxu0 %v242_v22 }
  0x43   :  { %244 = vmatprep.subr.bf16.mxu0 %v331_v0 }
  0x46   :  { %246 = vmatpush3.bf16.msra.mxu0 %v245_v25 }
  0x49   :  { %221 = vmatmul.mubr.f32.vlgmr.msra.gmra.mrb[0].mxu0 %v50_v26 }
 0x11c   :  { %v134_v28 = vpop.f32.mrb[0].mxu0 }
 0x11d   :  { %v138_v29 = vadd.f32 %v134_v28, %v51_v27  ;;  %v222_v30 = vpop.f32.mrb[1].mxu0 }
 0x11f   :  { %139 = vst [vmem:[#allocation2] sm:$0x3] %v138_v29 }
 0x126   :  { %v143_v32 = vld [vmem:[#allocation2] sm:$0x3] }
 0x127   :  { %v151_v33 = vadd.f32 %v170_v31, %v143_v32 }
 0x129   :  { %152 = vst [vmem:[#allocation8] sm:$0x3] %v151_v33 }
 0x12a   :  { %310 = shalt.err (!%p307_p6)
}
 0x12b   :  { %s311_s16 = scalar_lea.hbm %s404_s3, 32 }
 0x12c   :  { %p312_p7 = scmp.ne.s32.totalorder %s404_s3, %s311_s16  ;;  %p315_p8 = scmp.lt.u32.totalorder %s311_s16, %s404_s3 }
 0x12e   :  { %p317_p9 = pnand %p315_p8, %p312_p7 }
 0x130   :  { %320 = shalt.err (!%p317_p9)
}
 0x131   :  { %162 = dma.vmem_to_hbm [thread:$0]  %s160_s12, 32, %s404_s3, [#allocation5]  }
 0x132   :  { %325 = dma.done.wait [#allocation5], 32  }
 0x133   :  { %326 = vsyncadd [#allocation5], 4294967264 }
 0x134   :  { %166 = vsyncpa [#allocation4], 1 }
 0x135   :  { %167 = vsyncpa [#allocation7], 1 }
 0x136   :  { %168 = vsyncpa [#allocation5], 1 }

</bundles_post_ra>
